<compile_context>
chip_gen: v6e
topology: v6e:2x2x1
jax: 0.10.0
libtpu: 0.0.40
codegen_flags: <defaults>
</compile_context>

<pallas_src>
import jax
import jax.numpy as jnp
import numpy as np
from jax.experimental import pallas as pl
from jax.experimental.pallas import tpu as pltpu


# Packed-row layout of the single VMEM input (shape (24, Npad), f32):
#   0: x    1: y    2: z          joint coords, flattened batch-major
#   3: gt_x 4: gt_y               target 2-D keypoints
#   5: mask                       {0,1} joint-selection mask (0 on padding)
#   6: dz                         t_z - trans_est_z in lanes [0, B), else 0
#   7: (pad)
#   8..16: R row-major r00..r22   broadcast per point
#   17..19: t (tx, ty, tz)        broadcast per point
#   20: cx  21: cy                principal point, broadcast per point
#   22, 23: (pad)
_NUM_ROWS = 24


def _camera_init_loss_kernel(w_ref, d_ref, out_ref):
    # w_ref: SMEM (4,) = [data_weight, depth_loss_weight, fx, fy]
    # d_ref: VMEM (24, Npad) packed rows (layout above)
    # out_ref: VMEM (1, 1)
    x = d_ref[0:1, :]
    y = d_ref[1:2, :]
    z = d_ref[2:3, :]
    gt_x = d_ref[3:4, :]
    gt_y = d_ref[4:5, :]
    mask = d_ref[5:6, :]
    dz = d_ref[6:7, :]

    # Extrinsics: cam = R @ p + t  (R, t already broadcast per point).
    cam_x = d_ref[8:9, :] * x + d_ref[9:10, :] * y + d_ref[10:11, :] * z + d_ref[17:18, :]
    cam_y = d_ref[11:12, :] * x + d_ref[12:13, :] * y + d_ref[13:14, :] * z + d_ref[18:19, :]
    cam_z = d_ref[14:15, :] * x + d_ref[15:16, :] * y + d_ref[16:17, :] * z + d_ref[19:20, :]

    # One shared (approx, EUP) reciprocal instead of two divides.  The where()
    # only replaces cam_z on lanes the mask zeroes out anyway (padding and
    # unselected joints), so 0 * inf never turns into NaN; selected joints keep
    # the exact PyTorch divide-by-cam_z semantics.
    z_safe = jnp.where(mask > 0.0, cam_z, 1.0)
    inv_z = pl.reciprocal(z_safe, approx=True)

    fx = w_ref[2]
    fy = w_ref[3]
    img_x = fx * cam_x * inv_z + d_ref[20:21, :]
    img_y = fy * cam_y * inv_z + d_ref[21:22, :]

    err = ((gt_x - img_x) ** 2 + (gt_y - img_y) ** 2) * mask

    data_w = w_ref[0]
    depth_w = w_ref[1]
    joint_loss = jnp.sum(err) * (data_w * data_w)
    depth_loss = (depth_w * depth_w) * jnp.sum(dz * dz)

    out_ref[...] = (joint_loss + depth_loss).reshape(1, 1)


@jax.jit
def _smplify_camera_init_loss_impl(joints, rotation, translation, center,
                                   gt_joints, mask_j, trans_est, weights):
    B, J, _ = joints.shape
    n = B * J
    npad = max(128, ((n + 127) // 128) * 128)

    j32 = joints.astype(jnp.float32)
    g32 = gt_joints.astype(jnp.float32)
    r32 = rotation.astype(jnp.float32).reshape(B, 9)
    t32 = translation.astype(jnp.float32)
    c32 = center.astype(jnp.float32)
    te32 = trans_est.astype(jnp.float32)

    def flat(a):      # (B, J) -> (npad,) lane-dense, zero-padded
        return jnp.pad(a.reshape(n), (0, npad - n))

    def expand(v):    # per-batch (B,) -> per-point (npad,)
        return jnp.pad(jnp.repeat(v, J), (0, npad - n))

    dz = t32[:, 2] - te32[:, 2]                                      # (B,)
    zeros = jnp.zeros((npad,), jnp.float32)

    rows = [
        flat(j32[:, :, 0]), flat(j32[:, :, 1]), flat(j32[:, :, 2]),
        flat(g32[:, :, 0]), flat(g32[:, :, 1]),
        flat(jnp.broadcast_to(mask_j[None, :], (B, J))),
        jnp.pad(dz, (0, npad - B)),
        zeros,
    ]
    rows += [expand(r32[:, i]) for i in range(9)]
    rows += [expand(t32[:, i]) for i in range(3)]
    rows += [expand(c32[:, 0]), expand(c32[:, 1])]
    rows += [zeros, zeros]
    assert len(rows) == _NUM_ROWS
    data = jnp.stack(rows, axis=0)                                   # (24, npad)

    out = pl.pallas_call(
        _camera_init_loss_kernel,
        out_shape=jax.ShapeDtypeStruct((1, 1), jnp.float32),
        in_specs=[pl.BlockSpec(memory_space=pltpu.MemorySpace.SMEM),
                  pl.BlockSpec(memory_space=pltpu.MemorySpace.VMEM)],
        out_specs=pl.BlockSpec(memory_space=pltpu.MemorySpace.VMEM),
    )(weights, data)
    return out[0, 0]


def smplify_camera_init_loss(joints, rotation, translation, focal_length,
                             center, gt_joints, init_joints_idxs,
                             trans_estimation=None, data_weight=1.0,
                             depth_loss_weight=100.0):
    """joints: (B, J, 3); rotation: (B, 3, 3); translation: (B, 3);
    focal_length: (fx, fy) scalars; center: (B, 2); gt_joints: (B, J, 2)."""
    B, J, _ = joints.shape
    fx, fy = focal_length

    # index_select along the joint axis realised as a {0,1} mask (the loss is a
    # sum of squares, so masking == selecting).  NOTE: duplicate indices in
    # init_joints_idxs would be counted once here but twice by index_select.
    idxs = np.asarray(jax.device_get(init_joints_idxs)).reshape(-1).astype(np.int64)
    mask_np = np.zeros((J,), np.float32)
    mask_np[idxs] = 1.0
    mask_j = jnp.asarray(mask_np)

    # PyTorch checks `depth_loss_weight.item() > 0 and trans_estimation is not
    # None` on the host; resolve the same condition here at trace time.
    if trans_estimation is None or float(depth_loss_weight) <= 0.0:
        eff_depth_w = 0.0
        trans_est = jnp.zeros((B, 3), jnp.float32)
    else:
        eff_depth_w = float(depth_loss_weight)
        trans_est = trans_estimation

    weights = jnp.array([float(data_weight), eff_depth_w, float(fx), float(fy)],
                        jnp.float32)
    return _smplify_camera_init_loss_impl(joints, rotation, translation, center,
                                          gt_joints, mask_j, trans_est, weights)


def _reference_loss(joints, rotation, translation, focal_length, center,
                    gt_joints, init_joints_idxs, trans_estimation,
                    data_weight, depth_loss_weight):
    fx, fy = focal_length
    cam_pts = jnp.einsum('bij,bkj->bki', rotation, joints) + translation[:, None, :]
    img = cam_pts[..., :2] / cam_pts[..., 2:3]
    img = img * jnp.array([fx, fy], jnp.float32) + center[:, None, :]
    idxs = jnp.asarray(init_joints_idxs)
    joint_loss = jnp.sum((gt_joints[:, idxs, :] - img[:, idxs, :]) ** 2) * data_weight ** 2
    depth_loss = depth_loss_weight ** 2 * jnp.sum(
        (translation[:, 2] - trans_estimation[:, 2]) ** 2)
    return joint_loss + depth_loss


if __name__ == "__main__":
    key = jax.random.PRNGKey(0)
    B, J = 2, 16
    k1, k2, k3 = jax.random.split(key, 3)

    joints = jax.random.normal(k1, (B, J, 3), jnp.float32) * 0.3          # ~body scale
    gt_joints = jax.random.uniform(k2, (B, J, 2), jnp.float32) * 200.0 + 100.0
    # deterministic "camera" parameters (SMPLify-X PerspectiveCamera buffers)
    rotation = jnp.tile(jnp.eye(3, dtype=jnp.float32)[None], (B, 1, 1))
    translation = jnp.array([[0.05, -0.1, 2.5], [-0.02, 0.03, 3.0]], jnp.float32)
    focal_length = (500.0, 500.0)
    center = jnp.array([[128.0, 128.0], [128.0, 128.0]], jnp.float32)
    trans_estimation = translation + jax.random.normal(k3, (B, 3), jnp.float32) * 0.1
    init_joints_idxs = np.array([2, 5, 9, 12], dtype=np.int32)
    data_weight, depth_loss_weight = 1.0, 100.0

    loss = smplify_camera_init_loss(
        joints, rotation, translation, focal_length, center, gt_joints,
        init_joints_idxs, trans_estimation, data_weight, depth_loss_weight)
    loss = jax.block_until_ready(loss)

    ref = _reference_loss(joints, rotation, translation, focal_length, center,
                          gt_joints, init_joints_idxs, trans_estimation,
                          data_weight, depth_loss_weight)
    # Tolerance is slightly loose because the kernel uses the EUP approximate
    # reciprocal (per the perf review); loss magnitude here is ~1e5.
    assert np.allclose(np.asarray(loss), np.asarray(ref), rtol=1e-2, atol=1e-1), \
        f"mismatch: kernel={loss} ref={ref}"
    print("KERNEL_OK")
</pallas_src>

<mosaic_0001>
module attributes {stable_mosaic.version = 11 : i64} {
  func.func @_camera_init_loss_kernel(%arg0: memref<4xf32, #tpu.memory_space<smem>>, %arg1: memref<24x128xf32, #tpu.memory_space<vmem>>, %arg2: memref<1x1xf32, #tpu.memory_space<vmem>>) attributes {dimension_semantics = [], scalar_prefetch = 0 : i64, scratch_operands = 0 : i64, tpu.core_type = #tpu.core_type<tc>} {
    %c0 = arith.constant 0 : index
    %c0_0 = arith.constant 0 : index
    %0 = vector.load %arg1[%c0, %c0_0] : memref<24x128xf32, #tpu.memory_space<vmem>>, vector<1x128xf32>
    %c1 = arith.constant 1 : index
    %c0_1 = arith.constant 0 : index
    %1 = vector.load %arg1[%c1, %c0_1] : memref<24x128xf32, #tpu.memory_space<vmem>>, vector<1x128xf32>
    %c2 = arith.constant 2 : index
    %c0_2 = arith.constant 0 : index
    %2 = vector.load %arg1[%c2, %c0_2] : memref<24x128xf32, #tpu.memory_space<vmem>>, vector<1x128xf32>
    %c3 = arith.constant 3 : index
    %c0_3 = arith.constant 0 : index
    %3 = vector.load %arg1[%c3, %c0_3] : memref<24x128xf32, #tpu.memory_space<vmem>>, vector<1x128xf32>
    %c4 = arith.constant 4 : index
    %c0_4 = arith.constant 0 : index
    %4 = vector.load %arg1[%c4, %c0_4] : memref<24x128xf32, #tpu.memory_space<vmem>>, vector<1x128xf32>
    %c5 = arith.constant 5 : index
    %c0_5 = arith.constant 0 : index
    %5 = vector.load %arg1[%c5, %c0_5] : memref<24x128xf32, #tpu.memory_space<vmem>>, vector<1x128xf32>
    %c6 = arith.constant 6 : index
    %c0_6 = arith.constant 0 : index
    %6 = vector.load %arg1[%c6, %c0_6] : memref<24x128xf32, #tpu.memory_space<vmem>>, vector<1x128xf32>
    %c8 = arith.constant 8 : index
    %c0_7 = arith.constant 0 : index
    %7 = vector.load %arg1[%c8, %c0_7] : memref<24x128xf32, #tpu.memory_space<vmem>>, vector<1x128xf32>
    %8 = arith.mulf %7, %0 : vector<1x128xf32>
    %c9 = arith.constant 9 : index
    %c0_8 = arith.constant 0 : index
    %9 = vector.load %arg1[%c9, %c0_8] : memref<24x128xf32, #tpu.memory_space<vmem>>, vector<1x128xf32>
    %10 = arith.mulf %9, %1 : vector<1x128xf32>
    %11 = arith.addf %8, %10 : vector<1x128xf32>
    %c10 = arith.constant 10 : index
    %c0_9 = arith.constant 0 : index
    %12 = vector.load %arg1[%c10, %c0_9] : memref<24x128xf32, #tpu.memory_space<vmem>>, vector<1x128xf32>
    %13 = arith.mulf %12, %2 : vector<1x128xf32>
    %14 = arith.addf %11, %13 : vector<1x128xf32>
    %c17 = arith.constant 17 : index
    %c0_10 = arith.constant 0 : index
    %15 = vector.load %arg1[%c17, %c0_10] : memref<24x128xf32, #tpu.memory_space<vmem>>, vector<1x128xf32>
    %16 = arith.addf %14, %15 : vector<1x128xf32>
    %c11 = arith.constant 11 : index
    %c0_11 = arith.constant 0 : index
    %17 = vector.load %arg1[%c11, %c0_11] : memref<24x128xf32, #tpu.memory_space<vmem>>, vector<1x128xf32>
    %18 = arith.mulf %17, %0 : vector<1x128xf32>
    %c12 = arith.constant 12 : index
    %c0_12 = arith.constant 0 : index
    %19 = vector.load %arg1[%c12, %c0_12] : memref<24x128xf32, #tpu.memory_space<vmem>>, vector<1x128xf32>
    %20 = arith.mulf %19, %1 : vector<1x128xf32>
    %21 = arith.addf %18, %20 : vector<1x128xf32>
    %c13 = arith.constant 13 : index
    %c0_13 = arith.constant 0 : index
    %22 = vector.load %arg1[%c13, %c0_13] : memref<24x128xf32, #tpu.memory_space<vmem>>, vector<1x128xf32>
    %23 = arith.mulf %22, %2 : vector<1x128xf32>
    %24 = arith.addf %21, %23 : vector<1x128xf32>
    %c18 = arith.constant 18 : index
    %c0_14 = arith.constant 0 : index
    %25 = vector.load %arg1[%c18, %c0_14] : memref<24x128xf32, #tpu.memory_space<vmem>>, vector<1x128xf32>
    %26 = arith.addf %24, %25 : vector<1x128xf32>
    %c14 = arith.constant 14 : index
    %c0_15 = arith.constant 0 : index
    %27 = vector.load %arg1[%c14, %c0_15] : memref<24x128xf32, #tpu.memory_space<vmem>>, vector<1x128xf32>
    %28 = arith.mulf %27, %0 : vector<1x128xf32>
    %c15 = arith.constant 15 : index
    %c0_16 = arith.constant 0 : index
    %29 = vector.load %arg1[%c15, %c0_16] : memref<24x128xf32, #tpu.memory_space<vmem>>, vector<1x128xf32>
    %30 = arith.mulf %29, %1 : vector<1x128xf32>
    %31 = arith.addf %28, %30 : vector<1x128xf32>
    %c16 = arith.constant 16 : index
    %c0_17 = arith.constant 0 : index
    %32 = vector.load %arg1[%c16, %c0_17] : memref<24x128xf32, #tpu.memory_space<vmem>>, vector<1x128xf32>
    %33 = arith.mulf %32, %2 : vector<1x128xf32>
    %34 = arith.addf %31, %33 : vector<1x128xf32>
    %c19 = arith.constant 19 : index
    %c0_18 = arith.constant 0 : index
    %35 = vector.load %arg1[%c19, %c0_18] : memref<24x128xf32, #tpu.memory_space<vmem>>, vector<1x128xf32>
    %36 = arith.addf %34, %35 : vector<1x128xf32>
    %cst = arith.constant 0.000000e+00 : f32
    %37 = vector.broadcast %cst : f32 to vector<1x128xf32>
    %38 = arith.cmpf ogt, %5, %37 : vector<1x128xf32>
    %cst_19 = arith.constant 1.000000e+00 : f32
    %39 = vector.broadcast %cst_19 : f32 to vector<1x128xf32>
    %40 = arith.select %38, %36, %39 : vector<1x128xi1>, vector<1x128xf32>
    %41 = tpu.reciprocal %40 {approx = true} : vector<1x128xf32> -> vector<1x128xf32>
    %c2_20 = arith.constant 2 : index
    %42 = memref.load %arg0[%c2_20] : memref<4xf32, #tpu.memory_space<smem>>
    %c3_21 = arith.constant 3 : index
    %43 = memref.load %arg0[%c3_21] : memref<4xf32, #tpu.memory_space<smem>>
    %44 = vector.broadcast %42 : f32 to vector<1x128xf32>
    %45 = arith.mulf %44, %16 : vector<1x128xf32>
    %46 = arith.mulf %45, %41 : vector<1x128xf32>
    %c20 = arith.constant 20 : index
    %c0_22 = arith.constant 0 : index
    %47 = vector.load %arg1[%c20, %c0_22] : memref<24x128xf32, #tpu.memory_space<vmem>>, vector<1x128xf32>
    %48 = arith.addf %46, %47 : vector<1x128xf32>
    %49 = vector.broadcast %43 : f32 to vector<1x128xf32>
    %50 = arith.mulf %49, %26 : vector<1x128xf32>
    %51 = arith.mulf %50, %41 : vector<1x128xf32>
    %c21 = arith.constant 21 : index
    %c0_23 = arith.constant 0 : index
    %52 = vector.load %arg1[%c21, %c0_23] : memref<24x128xf32, #tpu.memory_space<vmem>>, vector<1x128xf32>
    %53 = arith.addf %51, %52 : vector<1x128xf32>
    %54 = arith.subf %3, %48 : vector<1x128xf32>
    %55 = arith.mulf %54, %54 : vector<1x128xf32>
    %56 = arith.subf %4, %53 : vector<1x128xf32>
    %57 = arith.mulf %56, %56 : vector<1x128xf32>
    %58 = arith.addf %55, %57 : vector<1x128xf32>
    %59 = arith.mulf %58, %5 : vector<1x128xf32>
    %c0_24 = arith.constant 0 : index
    %60 = memref.load %arg0[%c0_24] : memref<4xf32, #tpu.memory_space<smem>>
    %c1_25 = arith.constant 1 : index
    %61 = memref.load %arg0[%c1_25] : memref<4xf32, #tpu.memory_space<smem>>
    %62 = vector.shape_cast %59 : vector<1x128xf32> to vector<1x1x128xf32>
    %cst_26 = arith.constant dense<0.000000e+00> : vector<1xf32>
    %63 = vector.multi_reduction <add>, %62, %cst_26 [1, 2] : vector<1x1x128xf32> to vector<1xf32>
    %64 = vector.shape_cast %63 : vector<1xf32> to vector<1x1x1xf32>
    %65 = vector.extract %64[0, 0, 0] : f32 from vector<1x1x1xf32>
    %66 = arith.mulf %60, %60 : f32
    %67 = arith.mulf %65, %66 : f32
    %68 = arith.mulf %61, %61 : f32
    %69 = arith.mulf %6, %6 : vector<1x128xf32>
    %70 = vector.shape_cast %69 : vector<1x128xf32> to vector<1x1x128xf32>
    %cst_27 = arith.constant dense<0.000000e+00> : vector<1xf32>
    %71 = vector.multi_reduction <add>, %70, %cst_27 [1, 2] : vector<1x1x128xf32> to vector<1xf32>
    %72 = vector.shape_cast %71 : vector<1xf32> to vector<1x1x1xf32>
    %73 = vector.extract %72[0, 0, 0] : f32 from vector<1x1x1xf32>
    %74 = arith.mulf %68, %73 : f32
    %75 = arith.addf %67, %74 : f32
    %76 = vector.broadcast %75 : f32 to vector<1x1xf32>
    %c0_28 = arith.constant 0 : index
    %c0_29 = arith.constant 0 : index
    %77 = vector.load %arg2[%c0_28, %c0_29] : memref<1x1xf32, #tpu.memory_space<vmem>>, vector<1x1xf32>
    tpu.vector_store %arg2[%c0_28, %c0_29], %76 {strides = array<i32>} : memref<1x1xf32, #tpu.memory_space<vmem>>, vector<1x1xf32>,
    return
  }
}

</mosaic_0001>

<bundles_post_ra>
// kernel: sub.1
= control target key start
LH: loop header
LB: loop body
LE: loop exit
PB: predicated region body
PF: predicated region fallthrough
CT: control target
= control target key end

     0   :  { %s34_s0 = inlined_call_operand.vmem [shape: f32[2], index: 0, kind: input, shape index: {}]   ;;  %s35_s1 = inlined_call_operand.vmem [shape: f32[2], index: 1, kind: input, shape index: {}]   ;;  %s36_s2 = inlined_call_operand.vmem [shape: f32[2], index: 2, kind: output, shape index: {}]  }
   0x1   :  { %v3_v0 = vld [vmem:[%s34_s0] sm:$0x1] }
   0x2   :  { %v4_v1 = vld [vmem:[%s35_s1] sm:$0x1] }
   0x3   :  { %v7_v2 = vsub.f32 %v3_v0, %v4_v1 }
   0x5   :  { %9 = vst [vmem:[%s36_s2] sm:$0x1] %v7_v2 }

// kernel: squeeze.26
= control target key start
LH: loop header
LB: loop body
LE: loop exit
PB: predicated region body
PF: predicated region fallthrough
CT: control target
= control target key end

     0   :  { %vm8_vm0 = vcmask 130048   ;;  %vm14_vm1 = vcmask 261248   ;;  %s42_s0 = inlined_call_operand.vmem [shape: f32[2,16,1], index: 0, kind: input, shape index: {}]   ;;  %s43_s1 = inlined_call_operand.vmem [shape: f32[32], index: 1, kind: output, shape index: {}]  }
   0x1   :  { %v5_v0 = vld [vmem:[%s42_s0] sm:$0x3]  ;;  %s25_s0 = smov 16  }
   0x2   :  { %6 = vst [vmem:[#allocation1] sm:$0x3] %v5_v0 }
   0x9   :  { %v11_v1 = vld [vmem:[#allocation1 + $0x1] sm:$0x1]   ;;  %v7_v2 = vld [vmem:[#allocation1] sm:$0x1]  }
   0xa   :  { %12 = vrot.lane.b32.xlu0 %v11_v1, %s25_s0  ;;  %9 = vst.msk [vmem:[#allocation0] sm:$0x1] %vm8_vm0, %v7_v2  }
  0x7c   :  { %v13_v3 = vpop.permute.xlu0 %12  }
  0x7d   :  { %15 = vst.msk [vmem:[#allocation0] sm:$0x1] %vm14_vm1, %v13_v3  }
  0x84   :  { %v20_v4 = vld [vmem:[#allocation0] sm:$0x1] }
  0x85   :  { %23 = vst [vmem:[%s43_s1] sm:$0x1] %v20_v4 }

// kernel: _smplify_camera_init_loss_impl.1
= control target key start
LH: loop header
LB: loop body
LE: loop exit
PB: predicated region body
PF: predicated region fallthrough
CT: control target
= control target key end

     0   :  { %7 = vsyncpa [#allocation4], 0  ;;  %s263_s0 = inlined_call_operand.vmem [shape: f32[4], index: 0, kind: input, shape index: {}]   ;;  %s264_s1 = inlined_call_operand.vmem [shape: f32[24,128], index: 1, kind: input, shape index: {}]   ;;  %s265_s2 = inlined_call_operand.hbm [shape: f32[1,1], index: 2, kind: output, shape index: {}]  }
   0x1   :  { %8 = vsyncpa [#allocation3], 0  ;;  %s15_s11 = sshll.u32 %s263_s0, 4  ;;  %s16_s11 = int_to_ptr.vmem [resolvable:$true] %s15_s11 }
   0x2   :  { %s141_s12 = scalar_lea.vmem %s16_s11, 16  ;;  %p146_p1 = scmp.lt.s32.totalorder %s16_s11, %s16_s11 }
   0x3   :  { %p142_p0 = scmp.ne.s32.totalorder %s16_s11, %s141_s12  ;;  %p147_p2 = scmp.lt.s32.totalorder %s141_s12, %s141_s12 }
   0x5   :  { %p148_p3 = por %p147_p2, %p146_p1 }
   0x7   :  { %p149_p4 = pnand %p148_p3, %p142_p0 }
   0x9   :  { %152 = shalt.err (!%p149_p4)
}
   0xa   :  { %s177_s13 = smov [#allocation2]  }
   0xb   :  { %18 = dma.vmem_to_smem %s16_s11, 16, %s177_s13, [#allocation4]  }
   0xc   :  { %173 = dma.done.wait [#allocation4], 16  }
   0xd   :  { %174 = vsyncadd [#allocation4], 4294967280 }
   0xe   :  { %24 = sfence }
   0xf   :  { %v25_v0 = vld [vmem:[%s264_s1] sm:$0x1]  ;;  %v26_v1 = vld [vmem:[%s264_s1 + $0x1] sm:$0x1]  ;;  %v27_v2 = vld [vmem:[%s264_s1 + $0x2] sm:$0x1] }
  0x10   :  { %v52_v3 = vld [vmem:[%s264_s1 + $0xe] sm:$0x1]  ;;  %v32_v4 = vld [vmem:[%s264_s1 + $0x8] sm:$0x1]  ;;  %v54_v6 = vld [vmem:[%s264_s1 + $0xf] sm:$0x1] }
  0x11   :  { %v53_v5 = vmul.f32 %v52_v3, %v25_v0  ;;  %v57_v7 = vld [vmem:[%s264_s1 + $0x10] sm:$0x1]  ;;  %v34_v8 = vld [vmem:[%s264_s1 + $0x9] sm:$0x1]  ;;  %v42_v9 = vld [vmem:[%s264_s1 + $0xb] sm:$0x1]  ;;  %v55_v11 = vmul.f32 %v54_v6, %v26_v1  ;;  %v33_v15 = vmul.f32 %v32_v4, %v25_v0 }
  0x12   :  { %v44_v10 = vld [vmem:[%s264_s1 + $0xc] sm:$0x1]  ;;  %v58_v12 = vmul.f32 %v57_v7, %v27_v2  ;;  %v30_v13 = vld [vmem:[%s264_s1 + $0x5] sm:$0x1]  ;;  %v35_v16 = vmul.f32 %v34_v8, %v26_v1  ;;  %v43_v17 = vmul.f32 %v42_v9, %v25_v0  ;;  %v60_v19 = vld [vmem:[%s264_s1 + $0x13] sm:$0x1] }
  0x13   :  { %v56_v14 = vadd.f32 %v55_v11, %v53_v5  ;;  %v45_v18 = vmul.f32 %v44_v10, %v26_v1  ;;  %v37_v20 = vld [vmem:[%s264_s1 + $0xa] sm:$0x1]  ;;  %v47_v21 = vld [vmem:[%s264_s1 + $0xd] sm:$0x1]  ;;  %vm62_vm0 = vcmp.gt.f32.partialorder %v30_v13, 0.0  ;;  %s130_s13 = sld [smem:[#allocation2 + $0x2]] }
  0x14   :  { %v36_v24 = vadd.f32 %v35_v16, %v33_v15  ;;  %v38_v25 = vmul.f32 %v37_v20, %v27_v2  ;;  %v48_v27 = vmul.f32 %v47_v21, %v27_v2  ;;  %s131_s14 = sld [smem:[#allocation2 + $0x3]]  ;;  %v40_v31 = vld [vmem:[%s264_s1 + $0x11] sm:$0x1]  ;;  %v50_v32 = vld [vmem:[%s264_s1 + $0x12] sm:$0x1]  ;;  %vm85_vm1 = vcmask 1040384  }
  0x15   :  { %v59_v22 = vadd.f32 %v58_v12, %v56_v14  ;;  %v46_v26 = vadd.f32 %v45_v18, %v43_v17  ;;  %v70_v40 = vld [vmem:[%s264_s1 + $0x14] sm:$0x1]  ;;  %v75_v41 = vld [vmem:[%s264_s1 + $0x15] sm:$0x1]  ;;  %v28_v44 = vld [vmem:[%s264_s1 + $0x3] sm:$0x1] }
  0x16   :  { %v39_v29 = vadd.f32 %v38_v25, %v36_v24  ;;  %v29_v45 = vld [vmem:[%s264_s1 + $0x4] sm:$0x1]  ;;  %v31_v52 = vld [vmem:[%s264_s1 + $0x6] sm:$0x1]  ;;  %s83_s1 = sld [smem:[#allocation2]]  ;;  %s178_s7 = smov [#allocation5]  }
  0x17   :  { %v61_v23 = vadd.f32 %v60_v19, %v59_v22  ;;  %v49_v30 = vadd.f32 %v48_v27, %v46_v26  ;;  %v99_v55 = vmul.f32 %v31_v52, %v31_v52  ;;  %s132_s28 = sld [smem:[#allocation2 + $0x1]]  ;;  %s121_s8 = sshll.u32 %s178_s7, 4  ;;  %vm113_vm2 = vcmask 0   ;;  %s122_s8 = int_to_ptr.vmem [resolvable:$true] %s121_s8 }
  0x18   :  { %v41_v33 = vadd.f32 %v40_v31, %v39_v29  ;;  %s153_s10 = scalar_lea.vmem %s122_s8, 16  ;;  %s157_s11 = scalar_lea.vmem %s122_s8, 32 }
  0x19   :  { %v63_v28 = vsel %vm62_vm0, %v61_v23, 1.0  ;;  %v51_v34 = vadd.f32 %v50_v32, %v49_v30  ;;  %v67_v35 = vstv %s130_s13  ;;  %v100_v57 = vsel %vm85_vm1, %v99_v55, 0.0  ;;  %p154_p5 = scmp.ne.s32.totalorder %s122_s8, %s153_s10  ;;  %p158_p6 = scmp.lt.s32.totalorder %s122_s8, %s122_s8 }
  0x1a   :  { %139 = vrcp.f32 %v63_v28  ;;  %v72_v36 = vstv %s131_s14  ;;  %v68_v37 = vmul.f32 %v67_v35, %v41_v33  ;;  %p159_p7 = scmp.lt.s32.totalorder %s157_s11, %s153_s10 }
  0x1b   :  { %v73_v38 = vmul.f32 %v72_v36, %v51_v34 }
  0x1c   :  { %s96_s29 = smul.f32 %s83_s1, %s83_s1  ;;  %p160_p8 = por %p159_p7, %p158_p6 }
  0x1d   :  { %s98_s3 = smul.f32 %s132_s28, %s132_s28 }
  0x1e   :  { %p161_p9 = pnand %p160_p8, %p154_p5 }
  0x27   :  { %v140_v39 = vpop.eup %139 }
  0x28   :  { %v69_v42 = vmul.f32 %v140_v39, %v68_v37  ;;  %v74_v43 = vmul.f32 %v140_v39, %v73_v38 }
  0x2a   :  { %v71_v46 = vadd.f32 %v70_v40, %v69_v42  ;;  %v76_v47 = vadd.f32 %v75_v41, %v74_v43 }
  0x2c   :  { %v77_v48 = vsub.f32 %v28_v44, %v71_v46  ;;  %v79_v49 = vsub.f32 %v29_v45, %v76_v47 }
  0x2e   :  { %v78_v50 = vmul.f32 %v77_v48, %v77_v48  ;;  %v80_v51 = vmul.f32 %v79_v49, %v79_v49 }
  0x30   :  { %v81_v53 = vadd.f32 %v80_v51, %v78_v50 }
  0x32   :  { %v82_v54 = vmul.f32 %v81_v53, %v30_v13 }
  0x34   :  { %v86_v56 = vsel %vm85_vm1, %v82_v54, 0.0 }
  0x35   :  { %87 = vadd.xlane.f32.xlu0 %v86_v56 }
  0x39   :  { %101 = vadd.xlane.f32.xlu0 %v100_v57 }
  0xbe   :  { %v88_v58 = vpop.xlane.xlu0 %87 }
  0xbf   :  { %v89_v59 = vrot.slane %v88_v58, 4 }
  0xc1   :  { %v90_v60 = vadd.f32 %v89_v59, %v88_v58 }
  0xc2   :  { %v102_v61 = vpop.xlane.xlu0 %101 }
  0xc3   :  { %v91_v62 = vrot.slane %v90_v60, 2  ;;  %v103_v63 = vrot.slane %v102_v61, 4 }
  0xc5   :  { %v104_v0 = vadd.f32 %v103_v63, %v102_v61  ;;  %v92_v1 = vadd.f32 %v91_v62, %v90_v60 }
  0xc7   :  { %v105_v2 = vrot.slane %v104_v0, 2  ;;  %v93_v3 = vrot.slane %v92_v1, 1 }
  0xc9   :  { %v106_v4 = vadd.f32 %v105_v2, %v104_v0  ;;  %v94_v5 = vadd.f32 %v93_v3, %v92_v1 }
  0xcb   :  { %133 = vpush %v94_v5  ;;  %v107_v6 = vrot.slane %v106_v4, 1 }
  0xcd   :  { %v108_v7 = vadd.f32 %v107_v6, %v106_v4 }
  0xcf   :  { %135 = vpush %v108_v7 }
  0xfc   :  { %s134_s30 = spop %133 }
  0xfd   :  { %s97_s4 = smul.f32 %s134_s30, %s96_s29 }
 0x100   :  { %s136_s5 = spop %135 }
 0x101   :  { %s110_s6 = smul.f32 %s136_s5, %s98_s3 }
 0x103   :  { %s111_s9 = sadd.f32 %s110_s6, %s97_s4 }
 0x105   :  { %v112_v8 = vstv %s111_s9 }
 0x106   :  { %114 = vst.msk [vmem:[#allocation5] sm:$0x1] %vm113_vm2, %v112_v8 }
 0x107   :  { %164 = shalt.err (!%p161_p9)
}
 0x108   :  { %124 = dma.vmem_to_hbm [thread:$0]  %s122_s8, 16, %s265_s2, [#allocation3]  }
 0x109   :  { %175 = dma.done.wait [#allocation3], 16  }
 0x10a   :  { %176 = vsyncadd [#allocation3], 4294967280 }
 0x10b   :  { %128 = vsyncpa [#allocation3], 1 }
 0x10c   :  { %129 = vsyncpa [#allocation4], 1 }

</bundles_post_ra>
